<compile_context>
chip_gen: v7x
topology: tpu7x:2x2x1
jax: 0.10.0
libtpu: 0.0.40
codegen_flags: <defaults>
</compile_context>

<pallas_src>
import jax
import jax.numpy as jnp
from jax.experimental import pallas as pl
from jax.experimental.pallas import tpu as pltpu

EPS = 1e-5
NUM_BLOCKS = 2       # num_layers * N = 1 * 2
TILE_B_MAX = 512     # rows per grid step (multiple of 8); safe on v5e/v6e/v7x VMEM


# ----------------------------------------------------------------------------
# Kernel
# ----------------------------------------------------------------------------
def _left_right_kernel(x_ref, w_exp_ref, b_exp_ref,
                       w_lyr_ref, b_lyr_ref,
                       w_shr_ref, b_shr_ref, out_ref):
    """Fused left+right forward for one batch tile.

    x_ref     : (TB, 2*in_ch)   bf16  [x_left | x_right]
    w_exp_ref : (2*in_ch, 2C)   bf16  blockdiag(Wl^T*s_l, Wr^T*s_r)
    b_exp_ref : (1, 2C)         f32
    w_lyr_ref : (4, 2C, 2C)     bf16  per-layer block-diag weights (BN folded)
    b_lyr_ref : (4, 2C)         f32
    w_shr_ref : (2C, C)         bf16  shrink W^T with BN scale folded
    b_shr_ref : (1, C)          f32
    out_ref   : (TB, C)         f32
    """

    def dense_relu(x, w_bf16, b_f32):
        y = jnp.dot(x.astype(jnp.bfloat16), w_bf16,
                    preferred_element_type=jnp.float32)
        return jnp.maximum(y + b_f32, 0.0)

    # Expand: both sides at once via the block-diagonal weight.
    x = dense_relu(x_ref[...], w_exp_ref[...], b_exp_ref[...])   # (TB, 2C) f32

    # Residual chain: 2 blocks of (conv+bn+relu, conv+bn+relu) + skip.
    # Statically unrolled; weights indexed directly on the Ref (views).
    for blk in range(NUM_BLOCKS):
        res = x
        f = dense_relu(x, w_lyr_ref[2 * blk],
                       b_lyr_ref[2 * blk:2 * blk + 1, :])
        y = dense_relu(f, w_lyr_ref[2 * blk + 1],
                       b_lyr_ref[2 * blk + 1:2 * blk + 2, :])
        x = res + y

    # Shrink over the channel concat [xl | xr] (already the fused layout).
    out_ref[...] = dense_relu(x, w_shr_ref[...],
                              b_shr_ref[...]).astype(out_ref.dtype)


# ----------------------------------------------------------------------------
# Wrapper
# ----------------------------------------------------------------------------
@jax.jit
def left_right_forward(pos_2d_left, pos_2d_right,
                       bone_angle_left, bone_angle_right, params):
    """Flatten (B,V,C) inputs, concat [left | right], run the Pallas kernel."""
    B = pos_2d_left.shape[0]
    x = jnp.concatenate([
        pos_2d_left.reshape(B, -1), bone_angle_left.reshape(B, -1),
        pos_2d_right.reshape(B, -1), bone_angle_right.reshape(B, -1),
    ], axis=1).astype(jnp.bfloat16)                      # (B, 2*in_ch)

    two_in = x.shape[1]
    two_c = params["w_exp"].shape[1]
    c = params["w_shrink"].shape[1]

    tile_b = min(TILE_B_MAX, ((B + 7) // 8) * 8)
    b_pad = pl.cdiv(B, tile_b) * tile_b
    if b_pad != B:
        x = jnp.pad(x, ((0, b_pad - B), (0, 0)))

    const2 = lambda i: (0, 0)
    grid_spec = pltpu.PrefetchScalarGridSpec(
        num_scalar_prefetch=0,
        grid=(b_pad // tile_b,),
        in_specs=[
            pl.BlockSpec((tile_b, two_in), lambda i: (i, 0)),          # x tile
            pl.BlockSpec((two_in, two_c), const2),                     # w_exp
            pl.BlockSpec((1, two_c), const2),                          # b_exp
            pl.BlockSpec((2 * NUM_BLOCKS, two_c, two_c),
                         lambda i: (0, 0, 0)),                         # w_layers
            pl.BlockSpec((2 * NUM_BLOCKS, two_c), const2),             # b_layers
            pl.BlockSpec((two_c, c), const2),                          # w_shrink
            pl.BlockSpec((1, c), const2),                              # b_shrink
        ],
        out_specs=pl.BlockSpec((tile_b, c), lambda i: (i, 0)),
    )

    out = pl.pallas_call(
        _left_right_kernel,
        out_shape=jax.ShapeDtypeStruct((b_pad, c), jnp.float32),
        grid_spec=grid_spec,
        compiler_params=pltpu.CompilerParams(
            dimension_semantics=("parallel",)),
    )(x, params["w_exp"], params["b_exp"],
      params["w_layers"], params["b_layers"],
      params["w_shrink"], params["b_shrink"])

    # Match the PyTorch output shape (B, channels, 1).
    return out[:B, :, None]


# ----------------------------------------------------------------------------
# Parameter construction (PyTorch-like init, BN folded, block-diag packed)
# ----------------------------------------------------------------------------
def _conv1x1_weight(key, cin, cout):
    # PyTorch Conv1d default: U(-1/sqrt(fan_in), 1/sqrt(fan_in)); weight (cout, cin, 1).
    bound = 1.0 / jnp.sqrt(jnp.float32(cin))
    return jax.random.uniform(key, (cout, cin), jnp.float32, -bound, bound)


def _bn_scale_bias(key, c):
    k1, k2, k3, k4 = jax.random.split(key, 4)
    gamma = jax.random.uniform(k1, (c,), jnp.float32, 0.5, 1.5)
    beta = jax.random.uniform(k2, (c,), jnp.float32, -0.5, 0.5)
    mean = jax.random.uniform(k3, (c,), jnp.float32, -0.5, 0.5)
    var = jax.random.uniform(k4, (c,), jnp.float32, 0.5, 1.5)
    s = gamma / jnp.sqrt(var + EPS)
    b = beta - mean * s
    return s, b


def init_params(key, in_channels, channels):
    ks = jax.random.split(key, 10)

    # --- expand (left / right), BN scale folded into the weight ---
    wl = _conv1x1_weight(ks[0], in_channels, channels)
    sl, bl = _bn_scale_bias(ks[1], channels)
    wr = _conv1x1_weight(ks[2], in_channels, channels)
    sr, br = _bn_scale_bias(ks[3], channels)
    wl_f = wl.T * sl[None, :]                 # (in, C)
    wr_f = wr.T * sr[None, :]
    w_exp = jnp.zeros((2 * in_channels, 2 * channels), jnp.float32)
    w_exp = w_exp.at[:in_channels, :channels].set(wl_f)
    w_exp = w_exp.at[in_channels:, channels:].set(wr_f)
    b_exp = jnp.concatenate([bl, br])[None, :]

    # --- residual layers ---
    kl = jax.random.split(ks[4], 2 * NUM_BLOCKS)
    kbl = jax.random.split(ks[5], 2 * NUM_BLOCKS)
    kr = jax.random.split(ks[6], 2 * NUM_BLOCKS)
    kbr = jax.random.split(ks[7], 2 * NUM_BLOCKS)
    w_layers, b_layers = [], []
    lyr_l_w, lyr_l_b, lyr_r_w, lyr_r_b = [], [], [], []
    for i in range(2 * NUM_BLOCKS):
        wli = _conv1x1_weight(kl[i], channels, channels)
        sli, bli = _bn_scale_bias(kbl[i], channels)
        wri = _conv1x1_weight(kr[i], channels, channels)
        sri, bri = _bn_scale_bias(kbr[i], channels)
        wli_f = wli.T * sli[None, :]
        wri_f = wri.T * sri[None, :]
        w = jnp.zeros((2 * channels, 2 * channels), jnp.float32)
        w = w.at[:channels, :channels].set(wli_f)
        w = w.at[channels:, channels:].set(wri_f)
        w_layers.append(w)
        b_layers.append(jnp.concatenate([bli, bri]))
        lyr_l_w.append(wli_f); lyr_l_b.append(bli)
        lyr_r_w.append(wri_f); lyr_r_b.append(bri)
    w_layers = jnp.stack(w_layers)            # (4, 2C, 2C)
    b_layers = jnp.stack(b_layers)            # (4, 2C)

    # --- shrink (acts on the channel concat; no block-diag needed) ---
    w_shr = _conv1x1_weight(ks[8], 2 * channels, channels)   # (C, 2C)
    ss, bs = _bn_scale_bias(ks[9], channels)
    w_shrink = w_shr.T * ss[None, :]          # (2C, C)
    b_shrink = bs[None, :]

    bf16 = lambda a: a.astype(jnp.bfloat16)
    packed = {
        "w_exp": bf16(w_exp), "b_exp": b_exp,
        "w_layers": bf16(w_layers), "b_layers": b_layers,
        "w_shrink": bf16(w_shrink), "b_shrink": b_shrink,
    }

    # Reference params: per-side, unfused, using the SAME bf16-rounded weights
    # (cast back to f32) so the check validates the block-diag packing + kernel.
    r32 = lambda a: a.astype(jnp.bfloat16).astype(jnp.float32)
    ref = {
        "exp_l_w": r32(wl_f), "exp_l_b": bl,
        "exp_r_w": r32(wr_f), "exp_r_b": br,
        "lyr_l_w": [r32(w) for w in lyr_l_w], "lyr_l_b": lyr_l_b,
        "lyr_r_w": [r32(w) for w in lyr_r_w], "lyr_r_b": lyr_r_b,
        "shr_w": r32(w_shrink), "shr_b": bs,
    }
    return packed, ref


# ----------------------------------------------------------------------------
# Pure-JAX reference (eval-mode semantics, per-side / unfused structure)
# ----------------------------------------------------------------------------
def reference_forward(pos_l, pos_r, ang_l, ang_r, rp):
    B = pos_l.shape[0]
    xl = jnp.concatenate([pos_l.reshape(B, -1), ang_l.reshape(B, -1)], axis=1)
    xr = jnp.concatenate([pos_r.reshape(B, -1), ang_r.reshape(B, -1)], axis=1)

    def side(x, w0, b0, ws, bs):
        x = jax.nn.relu(x @ w0 + b0)
        for blk in range(NUM_BLOCKS):
            res = x
            f = jax.nn.relu(x @ ws[2 * blk] + bs[2 * blk])
            y = jax.nn.relu(f @ ws[2 * blk + 1] + bs[2 * blk + 1])
            x = res + y
        return x

    xl = side(xl, rp["exp_l_w"], rp["exp_l_b"], rp["lyr_l_w"], rp["lyr_l_b"])
    xr = side(xr, rp["exp_r_w"], rp["exp_r_b"], rp["lyr_r_w"], rp["lyr_r_b"])
    y = jnp.concatenate([xl, xr], axis=1) @ rp["shr_w"] + rp["shr_b"]
    return jax.nn.relu(y)[:, :, None]


# ----------------------------------------------------------------------------
# Test
# ----------------------------------------------------------------------------
if __name__ == "__main__":
    B, V1, C1 = 8, 8, 2        # pos_2d_*:     (B, 8, 2) -> 16 features
    V2, C2 = 8, 2              # bone_angle_*: (B, 8, 2) -> 16 features
    in_channels = V1 * C1 + V2 * C2   # 32
    channels = 32

    key = jax.random.PRNGKey(0)
    k_in, k_par = jax.random.split(key)
    ki = jax.random.split(k_in, 4)
    # Pre-round inputs to bf16-representable values so kernel/reference
    # divergence is only the in-kernel activation casts (bf16 MXU path).
    mk = lambda k, s: jax.random.normal(k, s, jnp.float32) \
        .astype(jnp.bfloat16).astype(jnp.float32)
    pos_2d_left = mk(ki[0], (B, V1, C1))
    pos_2d_right = mk(ki[1], (B, V1, C1))
    bone_angle_left = mk(ki[2], (B, V2, C2))
    bone_angle_right = mk(ki[3], (B, V2, C2))

    params, ref_params = init_params(k_par, in_channels, channels)

    out = left_right_forward(pos_2d_left, pos_2d_right,
                             bone_angle_left, bone_angle_right, params)
    out = jax.block_until_ready(out)

    ref = reference_forward(pos_2d_left, pos_2d_right,
                            bone_angle_left, bone_angle_right, ref_params)

    assert out.shape == (B, channels, 1), out.shape
    # bf16 weights/activations on the MXU -> relaxed tolerance vs f32 reference.
    assert jnp.allclose(out, ref, atol=5e-2, rtol=5e-2), \
        float(jnp.max(jnp.abs(out - ref)))

    print("KERNEL_OK")
</pallas_src>

<mosaic_0001>
module attributes {stable_mosaic.version = 11 : i64} {
  func.func @_left_right_kernel(%arg0: i32, %arg1: memref<8x64xbf16, #tpu.memory_space<vmem>>, %arg2: memref<64x64xbf16, #tpu.memory_space<vmem>>, %arg3: memref<1x64xf32, #tpu.memory_space<vmem>>, %arg4: memref<4x64x64xbf16, #tpu.memory_space<vmem>>, %arg5: memref<4x64xf32, #tpu.memory_space<vmem>>, %arg6: memref<64x32xbf16, #tpu.memory_space<vmem>>, %arg7: memref<1x32xf32, #tpu.memory_space<vmem>>, %arg8: memref<8x32xf32, #tpu.memory_space<vmem>>) attributes {dimension_semantics = [#tpu.dimension_semantics<parallel>], iteration_bounds = array<i64: 1>, scalar_prefetch = 0 : i64, scratch_operands = 0 : i64, tpu.core_type = #tpu.core_type<tc>, window_params = [{transform_indices = @transform_0, window_bounds = array<i64: 8, 64>}, {pipeline_mode = #tpu.pipeline_mode<synchronous>, transform_indices = @transform_1, window_bounds = array<i64: 64, 64>}, {pipeline_mode = #tpu.pipeline_mode<synchronous>, transform_indices = @transform_2, window_bounds = array<i64: 1, 64>}, {pipeline_mode = #tpu.pipeline_mode<synchronous>, transform_indices = @transform_3, window_bounds = array<i64: 4, 64, 64>}, {pipeline_mode = #tpu.pipeline_mode<synchronous>, transform_indices = @transform_4, window_bounds = array<i64: 4, 64>}, {pipeline_mode = #tpu.pipeline_mode<synchronous>, transform_indices = @transform_5, window_bounds = array<i64: 64, 32>}, {pipeline_mode = #tpu.pipeline_mode<synchronous>, transform_indices = @transform_6, window_bounds = array<i64: 1, 32>}, {transform_indices = @transform_7, window_bounds = array<i64: 8, 32>}]} {
    %c0 = arith.constant 0 : index
    %c0_0 = arith.constant 0 : index
    %0 = vector.load %arg1[%c0, %c0_0] : memref<8x64xbf16, #tpu.memory_space<vmem>>, vector<8x64xbf16>
    %c0_1 = arith.constant 0 : index
    %c0_2 = arith.constant 0 : index
    %1 = vector.load %arg2[%c0_1, %c0_2] : memref<64x64xbf16, #tpu.memory_space<vmem>>, vector<64x64xbf16>
    %c0_3 = arith.constant 0 : index
    %c0_4 = arith.constant 0 : index
    %2 = vector.load %arg3[%c0_3, %c0_4] : memref<1x64xf32, #tpu.memory_space<vmem>>, vector<1x64xf32>
    %cst = arith.constant dense<0.000000e+00> : vector<8x64xf32>
    %3 = tpu.matmul %0, %1, %cst {dimension_numbers = #tpu.dot_dimension_numbers<[1], [0], [0], [1], [0, 0, 1, 1], [], []>} : vector<8x64xbf16>, vector<64x64xbf16>, vector<8x64xf32> -> vector<8x64xf32>
    %4 = vector.broadcast %2 : vector<1x64xf32> to vector<8x64xf32>
    %5 = arith.addf %3, %4 : vector<8x64xf32>
    %cst_5 = arith.constant 0.000000e+00 : f32
    %6 = vector.broadcast %cst_5 : f32 to vector<8x64xf32>
    %7 = arith.maximumf %5, %6 : vector<8x64xf32>
    %c0_6 = arith.constant 0 : index
    %c0_7 = arith.constant 0 : index
    %c0_8 = arith.constant 0 : index
    %8 = vector.load %arg4[%c0_6, %c0_7, %c0_8] : memref<4x64x64xbf16, #tpu.memory_space<vmem>>, vector<1x64x64xbf16>
    %9 = vector.shape_cast %8 : vector<1x64x64xbf16> to vector<64x64xbf16>
    %c0_9 = arith.constant 0 : index
    %c0_10 = arith.constant 0 : index
    %10 = vector.load %arg5[%c0_9, %c0_10] : memref<4x64xf32, #tpu.memory_space<vmem>>, vector<1x64xf32>
    %11 = arith.truncf %7 : vector<8x64xf32> to vector<8x64xbf16>
    %cst_11 = arith.constant dense<0.000000e+00> : vector<8x64xf32>
    %12 = tpu.matmul %11, %9, %cst_11 {dimension_numbers = #tpu.dot_dimension_numbers<[1], [0], [0], [1], [0, 0, 1, 1], [], []>} : vector<8x64xbf16>, vector<64x64xbf16>, vector<8x64xf32> -> vector<8x64xf32>
    %13 = vector.broadcast %10 : vector<1x64xf32> to vector<8x64xf32>
    %14 = arith.addf %12, %13 : vector<8x64xf32>
    %cst_12 = arith.constant 0.000000e+00 : f32
    %15 = vector.broadcast %cst_12 : f32 to vector<8x64xf32>
    %16 = arith.maximumf %14, %15 : vector<8x64xf32>
    %c1 = arith.constant 1 : index
    %c0_13 = arith.constant 0 : index
    %c0_14 = arith.constant 0 : index
    %17 = vector.load %arg4[%c1, %c0_13, %c0_14] : memref<4x64x64xbf16, #tpu.memory_space<vmem>>, vector<1x64x64xbf16>
    %18 = vector.shape_cast %17 : vector<1x64x64xbf16> to vector<64x64xbf16>
    %c1_15 = arith.constant 1 : index
    %c0_16 = arith.constant 0 : index
    %19 = vector.load %arg5[%c1_15, %c0_16] : memref<4x64xf32, #tpu.memory_space<vmem>>, vector<1x64xf32>
    %20 = arith.truncf %16 : vector<8x64xf32> to vector<8x64xbf16>
    %cst_17 = arith.constant dense<0.000000e+00> : vector<8x64xf32>
    %21 = tpu.matmul %20, %18, %cst_17 {dimension_numbers = #tpu.dot_dimension_numbers<[1], [0], [0], [1], [0, 0, 1, 1], [], []>} : vector<8x64xbf16>, vector<64x64xbf16>, vector<8x64xf32> -> vector<8x64xf32>
    %22 = vector.broadcast %19 : vector<1x64xf32> to vector<8x64xf32>
    %23 = arith.addf %21, %22 : vector<8x64xf32>
    %cst_18 = arith.constant 0.000000e+00 : f32
    %24 = vector.broadcast %cst_18 : f32 to vector<8x64xf32>
    %25 = arith.maximumf %23, %24 : vector<8x64xf32>
    %26 = arith.addf %7, %25 : vector<8x64xf32>
    %c2 = arith.constant 2 : index
    %c0_19 = arith.constant 0 : index
    %c0_20 = arith.constant 0 : index
    %27 = vector.load %arg4[%c2, %c0_19, %c0_20] : memref<4x64x64xbf16, #tpu.memory_space<vmem>>, vector<1x64x64xbf16>
    %28 = vector.shape_cast %27 : vector<1x64x64xbf16> to vector<64x64xbf16>
    %c2_21 = arith.constant 2 : index
    %c0_22 = arith.constant 0 : index
    %29 = vector.load %arg5[%c2_21, %c0_22] : memref<4x64xf32, #tpu.memory_space<vmem>>, vector<1x64xf32>
    %30 = arith.truncf %26 : vector<8x64xf32> to vector<8x64xbf16>
    %cst_23 = arith.constant dense<0.000000e+00> : vector<8x64xf32>
    %31 = tpu.matmul %30, %28, %cst_23 {dimension_numbers = #tpu.dot_dimension_numbers<[1], [0], [0], [1], [0, 0, 1, 1], [], []>} : vector<8x64xbf16>, vector<64x64xbf16>, vector<8x64xf32> -> vector<8x64xf32>
    %32 = vector.broadcast %29 : vector<1x64xf32> to vector<8x64xf32>
    %33 = arith.addf %31, %32 : vector<8x64xf32>
    %cst_24 = arith.constant 0.000000e+00 : f32
    %34 = vector.broadcast %cst_24 : f32 to vector<8x64xf32>
    %35 = arith.maximumf %33, %34 : vector<8x64xf32>
    %c3 = arith.constant 3 : index
    %c0_25 = arith.constant 0 : index
    %c0_26 = arith.constant 0 : index
    %36 = vector.load %arg4[%c3, %c0_25, %c0_26] : memref<4x64x64xbf16, #tpu.memory_space<vmem>>, vector<1x64x64xbf16>
    %37 = vector.shape_cast %36 : vector<1x64x64xbf16> to vector<64x64xbf16>
    %c3_27 = arith.constant 3 : index
    %c0_28 = arith.constant 0 : index
    %38 = vector.load %arg5[%c3_27, %c0_28] : memref<4x64xf32, #tpu.memory_space<vmem>>, vector<1x64xf32>
    %39 = arith.truncf %35 : vector<8x64xf32> to vector<8x64xbf16>
    %cst_29 = arith.constant dense<0.000000e+00> : vector<8x64xf32>
    %40 = tpu.matmul %39, %37, %cst_29 {dimension_numbers = #tpu.dot_dimension_numbers<[1], [0], [0], [1], [0, 0, 1, 1], [], []>} : vector<8x64xbf16>, vector<64x64xbf16>, vector<8x64xf32> -> vector<8x64xf32>
    %41 = vector.broadcast %38 : vector<1x64xf32> to vector<8x64xf32>
    %42 = arith.addf %40, %41 : vector<8x64xf32>
    %cst_30 = arith.constant 0.000000e+00 : f32
    %43 = vector.broadcast %cst_30 : f32 to vector<8x64xf32>
    %44 = arith.maximumf %42, %43 : vector<8x64xf32>
    %45 = arith.addf %26, %44 : vector<8x64xf32>
    %c0_31 = arith.constant 0 : index
    %c0_32 = arith.constant 0 : index
    %46 = vector.load %arg6[%c0_31, %c0_32] : memref<64x32xbf16, #tpu.memory_space<vmem>>, vector<64x32xbf16>
    %c0_33 = arith.constant 0 : index
    %c0_34 = arith.constant 0 : index
    %47 = vector.load %arg7[%c0_33, %c0_34] : memref<1x32xf32, #tpu.memory_space<vmem>>, vector<1x32xf32>
    %48 = arith.truncf %45 : vector<8x64xf32> to vector<8x64xbf16>
    %cst_35 = arith.constant dense<0.000000e+00> : vector<8x32xf32>
    %49 = tpu.matmul %48, %46, %cst_35 {dimension_numbers = #tpu.dot_dimension_numbers<[1], [0], [0], [1], [0, 0, 1, 1], [], []>} : vector<8x64xbf16>, vector<64x32xbf16>, vector<8x32xf32> -> vector<8x32xf32>
    %50 = vector.broadcast %47 : vector<1x32xf32> to vector<8x32xf32>
    %51 = arith.addf %49, %50 : vector<8x32xf32>
    %cst_36 = arith.constant 0.000000e+00 : f32
    %52 = vector.broadcast %cst_36 : f32 to vector<8x32xf32>
    %53 = arith.maximumf %51, %52 : vector<8x32xf32>
    %c0_37 = arith.constant 0 : index
    %c0_38 = arith.constant 0 : index
    %54 = vector.load %arg8[%c0_37, %c0_38] : memref<8x32xf32, #tpu.memory_space<vmem>>, vector<8x32xf32>
    tpu.vector_store %arg8[%c0_37, %c0_38], %53 {strides = array<i32>} : memref<8x32xf32, #tpu.memory_space<vmem>>, vector<8x32xf32>,
    return
  }
  func.func @transform_0(%arg0: i32) -> (i32, i32) {
    %c0_i32 = arith.constant 0 : i32
    %c0_i32_0 = arith.constant 0 : i32
    return %arg0, %c0_i32 : i32, i32
  }
  func.func @transform_1(%arg0: i32) -> (i32, i32) {
    %c0_i32 = arith.constant 0 : i32
    %c0_i32_0 = arith.constant 0 : i32
    %c0_i32_1 = arith.constant 0 : i32
    return %c0_i32, %c0_i32_0 : i32, i32
  }
  func.func @transform_2(%arg0: i32) -> (i32, i32) {
    %c0_i32 = arith.constant 0 : i32
    %c0_i32_0 = arith.constant 0 : i32
    %c0_i32_1 = arith.constant 0 : i32
    return %c0_i32, %c0_i32_0 : i32, i32
  }
  func.func @transform_3(%arg0: i32) -> (i32, i32, i32) {
    %c0_i32 = arith.constant 0 : i32
    %c0_i32_0 = arith.constant 0 : i32
    %c0_i32_1 = arith.constant 0 : i32
    %c0_i32_2 = arith.constant 0 : i32
    return %c0_i32, %c0_i32_0, %c0_i32_1 : i32, i32, i32
  }
  func.func @transform_4(%arg0: i32) -> (i32, i32) {
    %c0_i32 = arith.constant 0 : i32
    %c0_i32_0 = arith.constant 0 : i32
    %c0_i32_1 = arith.constant 0 : i32
    return %c0_i32, %c0_i32_0 : i32, i32
  }
  func.func @transform_5(%arg0: i32) -> (i32, i32) {
    %c0_i32 = arith.constant 0 : i32
    %c0_i32_0 = arith.constant 0 : i32
    %c0_i32_1 = arith.constant 0 : i32
    return %c0_i32, %c0_i32_0 : i32, i32
  }
  func.func @transform_6(%arg0: i32) -> (i32, i32) {
    %c0_i32 = arith.constant 0 : i32
    %c0_i32_0 = arith.constant 0 : i32
    %c0_i32_1 = arith.constant 0 : i32
    return %c0_i32, %c0_i32_0 : i32, i32
  }
  func.func @transform_7(%arg0: i32) -> (i32, i32) {
    %c0_i32 = arith.constant 0 : i32
    %c0_i32_0 = arith.constant 0 : i32
    return %arg0, %c0_i32 : i32, i32
  }
}

</mosaic_0001>

<bundles_post_ra>
// kernel: left_right_forward.1
= control target key start
LH: loop header
LB: loop body
LE: loop exit
PB: predicated region body
PF: predicated region fallthrough
CT: control target
= control target key end

     0   :  { %v759_v1 = vmov 0.0   ;;  %vm760_vm0 = vmmov 0   ;;  %vm68_vm1 = vcmask 523264   ;;  %s949_s0 = inlined_call_operand.vmem [shape: bf16[8,64], index: 0, kind: input, shape index: {}]   ;;  %s950_s1 = inlined_call_operand.vmem [shape: bf16[64,64], index: 1, kind: input, shape index: {}]   ;;  %s951_s2 = inlined_call_operand.vmem [shape: f32[1,64], index: 2, kind: input, shape index: {}]   ;;  %s952_s3 = inlined_call_operand.vmem [shape: bf16[4,64,64], index: 3, kind: input, shape index: {}]   ;;  %s953_s4 = inlined_call_operand.vmem [shape: f32[4,64], index: 4, kind: input, shape index: {}]   ;;  %s954_s5 = inlined_call_operand.vmem [shape: bf16[64,32], index: 5, kind: input, shape index: {}]   ;;  %s955_s6 = inlined_call_operand.vmem [shape: f32[1,32], index: 6, kind: input, shape index: {}]   ;;  %s956_s7 = inlined_call_operand.hbm [shape: f32[8,32], index: 7, kind: output, shape index: {}]  }
   0x1   :  { %v711_v0 = vld [vmem:[%s950_s1] sm:$0xff]   ;;  %636 = vmatprep.subr.bf16.mxu0 %v759_v1  ;;  %648 = vmatprep.subr.bf16.mxu1 %v759_v1  ;;  %v712_v2 = vld [vmem:[%s950_s1 + $0x8] sm:$0xff]   ;;  %v713_v4 = vld [vmem:[%s950_s1 + $0x10] sm:$0xff]  }
   0x2   :  { %637 = vmatpush3.bf16.msra.mxu0 %v711_v0  ;;  %644 = vmatprep.mubr.msk.bf16.mxu0 %vm760_vm0, %v759_v1  ;;  %v715_v3 = vld [vmem:[%s952_s3] sm:$0xff]   ;;  %v716_v5 = vld [vmem:[%s952_s3 + $0x8] sm:$0xff]   ;;  %v714_v6 = vld [vmem:[%s950_s1 + $0x18] sm:$0xff]  }
   0x3   :  { %638 = vmatprep.subr.bf16.mxu0 %v759_v1  ;;  %656 = vmatprep.mubr.msk.bf16.mxu1 %vm760_vm0, %v759_v1  ;;  %v28_v7 = vld [vmem:[%s949_s0] sm:$0xf] }
   0x4   :  { %649 = vmatpush3.bf16.msra.mxu1 %v715_v3 }
   0x5   :  { %650 = vmatprep.subr.bf16.mxu1 %v759_v1 }
   0x6   :  { %639 = vmatpush3.bf16.msra.mxu0 %v712_v2 }
   0x7   :  { %640 = vmatprep.subr.bf16.mxu0 %v759_v1 }
   0x8   :  { %651 = vmatpush3.bf16.msra.mxu1 %v716_v5 }
   0x9   :  { %652 = vmatprep.subr.bf16.mxu1 %v759_v1 }
   0xa   :  { %641 = vmatpush3.bf16.msra.mxu0 %v713_v4 }
   0xb   :  { %642 = vmatprep.subr.bf16.mxu0 %v759_v1 }
   0xe   :  { %643 = vmatpush3.bf16.msra.mxu0 %v714_v6 }
   0xf   :  { %660 = vmatprep.subr.bf16.mxu0 %v759_v1 }
  0x11   :  { %645 = vmatmul.mubr.msk.bf16.vlgmr.msra.gmra.mrb[0].mxu0 %vm68_vm1, %v28_v7 }
  0x12   :  { %668 = vmatprep.mubr.msk.bf16.mxu0 %vm760_vm0, %v759_v1 }
  0x13   :  { %12 = vsyncpa [#allocation3], 0  ;;  %v717_v8 = vld [vmem:[%s952_s3 + $0x10] sm:$0xff]   ;;  %v718_v9 = vld [vmem:[%s952_s3 + $0x18] sm:$0xff]   ;;  %vm530_vm2 = vcmask 261120  }
  0x14   :  { %653 = vmatpush3.bf16.msra.mxu1 %v717_v8  ;;  %v719_v10 = vld [vmem:[%s952_s3 + $0x20] sm:$0xff]   ;;  %v720_v11 = vld [vmem:[%s952_s3 + $0x28] sm:$0xff]   ;;  %v721_v20 = vld [vmem:[%s952_s3 + $0x30] sm:$0xff]  }
  0x15   :  { %654 = vmatprep.subr.bf16.mxu1 %v759_v1  ;;  %661 = vmatpush3.bf16.msra.mxu0 %v719_v10  ;;  %v546_v12 = vld [vmem:[%s951_s2] ss:$0 sm:$0xff]  ;;  %v722_v21 = vld [vmem:[%s952_s3 + $0x38] sm:$0xff]   ;;  %v724_v23 = vld [vmem:[%s952_s3 + $0x48] sm:$0xff]  }
  0x16   :  { %662 = vmatprep.subr.bf16.mxu0 %v759_v1  ;;  %v723_v22 = vld [vmem:[%s952_s3 + $0x40] sm:$0xff]   ;;  %v725_v32 = vld [vmem:[%s952_s3 + $0x50] sm:$0xff]   ;;  %v726_v33 = vld [vmem:[%s952_s3 + $0x58] sm:$0xff]  }
  0x17   :  { %v552_v24 = vld [vmem:[%s953_s4] ss:$0 sm:$0xff]  ;;  %v728_v35 = vld [vmem:[%s952_s3 + $0x68] sm:$0xff]   ;;  %v566_v36 = vld [vmem:[%s953_s4 + $0x1] ss:$0 sm:$0xff] }
  0x18   :  { %655 = vmatpush3.bf16.msra.mxu1 %v718_v9  ;;  %v727_v34 = vld [vmem:[%s952_s3 + $0x60] sm:$0xff]   ;;  %v729_v45 = vld [vmem:[%s952_s3 + $0x70] sm:$0xff]   ;;  %v730_v46 = vld [vmem:[%s952_s3 + $0x78] sm:$0xff]  }
  0x19   :  { %672 = vmatprep.subr.bf16.mxu1 %v759_v1  ;;  %663 = vmatpush3.bf16.msra.mxu0 %v720_v11  ;;  %v731_v47 = vld [vmem:[%s954_s5] sm:$0xff]   ;;  %v732_v48 = vld [vmem:[%s954_s5 + $0x8] sm:$0xff]   ;;  %v733_v57 = vld [vmem:[%s954_s5 + $0x10] sm:$0xff]  }
  0x1a   :  { %664 = vmatprep.subr.bf16.mxu0 %v759_v1  ;;  %v580_v49 = vld [vmem:[%s953_s4 + $0x2] ss:$0 sm:$0xff]  ;;  %v734_v58 = vld [vmem:[%s954_s5 + $0x18] sm:$0xff]   ;;  %v594_v59 = vld [vmem:[%s953_s4 + $0x3] ss:$0 sm:$0xff]  ;;  %s761_s5 = smov [#allocation2]  }
  0x1b   :  { %s538_s10 = sshll.u32 %s761_s5, 4  ;;  %s539_s10 = int_to_ptr.vmem [resolvable:$true] %s538_s10 }
  0x1c   :  { %s735_s4 = scalar_lea.vmem %s539_s10, 128  ;;  %p740_p1 = scmp.lt.s32.totalorder %s539_s10, %s539_s10 }
  0x1d   :  { %665 = vmatpush3.bf16.msra.mxu0 %v721_v20  ;;  %p736_p0 = scmp.ne.s32.totalorder %s539_s10, %s735_s4  ;;  %p741_p2 = scmp.lt.s32.totalorder %s735_s4, %s735_s4 }
  0x1e   :  { %666 = vmatprep.subr.bf16.mxu0 %v759_v1 }
  0x1f   :  { %p742_p3 = por %p741_p2, %p740_p1 }
  0x21   :  { %667 = vmatpush3.bf16.msra.mxu0 %v722_v21  ;;  %p743_p4 = pnand %p742_p3, %p736_p0 }
  0x22   :  { %684 = vmatprep.subr.bf16.mxu0 %v759_v1 }
  0xe4   :  { %v106_v13 = vpop.f32.mrb[0].mxu0 }
  0xe5   :  { %v107_v14 = vadd.f32 %v546_v12, %v106_v13  ;;  %v646_v15 = vpop.f32.mrb[1].mxu0 }
  0xe6   :  { %v109_v16 = vpop.f32.mrb[2].mxu0 }
  0xe7   :  { %v112_v17 = vmax.f32 %v107_v14, 0.0  ;;  %v647_v18 = vpop.f32.mrb[3].mxu0 }
  0xe9   :  { %v122_v19 = vpack.c.bf16 %v112_v17, %v112_v17 }
  0xeb   :  { %657 = vmatmul.mubr.msk.bf16.vlgmr.msra.gmra.mrb[0].mxu1 %vm68_vm1, %v122_v19 }
  0xec   :  { %680 = vmatprep.mubr.msk.bf16.mxu1 %vm760_vm0, %v759_v1  ;;  %673 = vmatpush3.bf16.msra.mxu1 %v723_v22 }
  0xed   :  { %674 = vmatprep.subr.bf16.mxu1 %v759_v1 }
  0xf0   :  { %675 = vmatpush3.bf16.msra.mxu1 %v724_v23 }
  0xf1   :  { %676 = vmatprep.subr.bf16.mxu1 %v759_v1 }
  0xf4   :  { %677 = vmatpush3.bf16.msra.mxu1 %v725_v32 }
  0xf5   :  { %678 = vmatprep.subr.bf16.mxu1 %v759_v1 }
  0xf8   :  { %679 = vmatpush3.bf16.msra.mxu1 %v726_v33 }
  0xf9   :  { %696 = vmatprep.subr.bf16.mxu1 %v759_v1 }
 0x1be   :  { %v188_v25 = vpop.f32.mrb[0].mxu1 }
 0x1bf   :  { %v189_v26 = vadd.f32 %v552_v24, %v188_v25  ;;  %v658_v27 = vpop.f32.mrb[1].mxu1 }
 0x1c0   :  { %v191_v28 = vpop.f32.mrb[2].mxu1 }
 0x1c1   :  { %v194_v29 = vmax.f32 %v189_v26, 0.0  ;;  %v659_v30 = vpop.f32.mrb[3].mxu1 }
 0x1c3   :  { %v205_v31 = vpack.c.bf16 %v194_v29, %v194_v29 }
 0x1c5   :  { %669 = vmatmul.mubr.msk.bf16.vlgmr.msra.gmra.mrb[4].mxu0 %vm68_vm1, %v205_v31 }
 0x1c6   :  { %692 = vmatprep.mubr.msk.bf16.mxu0 %vm760_vm0, %v759_v1  ;;  %685 = vmatpush3.bf16.msra.mxu0 %v727_v34 }
 0x1c7   :  { %686 = vmatprep.subr.bf16.mxu0 %v759_v1 }
 0x1ca   :  { %687 = vmatpush3.bf16.msra.mxu0 %v728_v35 }
 0x1cb   :  { %688 = vmatprep.subr.bf16.mxu0 %v759_v1 }
 0x1ce   :  { %689 = vmatpush3.bf16.msra.mxu0 %v729_v45 }
 0x1cf   :  { %690 = vmatprep.subr.bf16.mxu0 %v759_v1 }
 0x1d2   :  { %691 = vmatpush3.bf16.msra.mxu0 %v730_v46 }
 0x298   :  { %v271_v37 = vpop.f32.mrb[4].mxu0 }
 0x299   :  { %v272_v38 = vadd.f32 %v566_v36, %v271_v37  ;;  %v670_v39 = vpop.f32.mrb[5].mxu0 }
 0x29a   :  { %v274_v40 = vpop.f32.mrb[6].mxu0 }
 0x29b   :  { %v277_v41 = vmax.f32 %v272_v38, 0.0  ;;  %v671_v42 = vpop.f32.mrb[7].mxu0 }
 0x29d   :  { %v278_v43 = vadd.f32 %v277_v41, %v112_v17 }
 0x29f   :  { %v289_v44 = vpack.c.bf16 %v278_v43, %v278_v43 }
 0x2a1   :  { %681 = vmatmul.mubr.msk.bf16.vlgmr.msra.gmra.mrb[4].mxu1 %vm68_vm1, %v289_v44 }
 0x2a2   :  { %704 = vmatprep.mubr.msk.bf16.mxu1 %vm760_vm0, %v759_v1  ;;  %697 = vmatpush3.bf16.msra.mxu1 %v731_v47 }
 0x2a3   :  { %698 = vmatprep.subr.bf16.mxu1 %v759_v1 }
 0x2a6   :  { %699 = vmatpush3.bf16.msra.mxu1 %v732_v48 }
 0x2a7   :  { %700 = vmatprep.subr.bf16.mxu1 %v759_v1 }
 0x2aa   :  { %701 = vmatpush3.bf16.msra.mxu1 %v733_v57 }
 0x2ab   :  { %702 = vmatprep.subr.bf16.mxu1 %v759_v1  ;;  %v600_v1 = vld [vmem:[%s955_s6] ss:$0 sm:$0xff] }
 0x2ae   :  { %703 = vmatpush3.bf16.msra.mxu1 %v734_v58 }
 0x374   :  { %v355_v50 = vpop.f32.mrb[4].mxu1 }
 0x375   :  { %v356_v51 = vadd.f32 %v580_v49, %v355_v50  ;;  %v682_v52 = vpop.f32.mrb[5].mxu1 }
 0x376   :  { %v358_v53 = vpop.f32.mrb[6].mxu1 }
 0x377   :  { %v361_v54 = vmax.f32 %v356_v51, 0.0  ;;  %v683_v55 = vpop.f32.mrb[7].mxu1 }
 0x379   :  { %v372_v56 = vpack.c.bf16 %v361_v54, %v361_v54 }
 0x37b   :  { %693 = vmatmul.mubr.msk.bf16.vlgmr.msra.gmra.mrb[8].mxu0 %vm68_vm1, %v372_v56 }
 0x44e   :  { %v438_v60 = vpop.f32.mrb[8].mxu0 }
 0x44f   :  { %v439_v61 = vadd.f32 %v594_v59, %v438_v60  ;;  %v694_v62 = vpop.f32.mrb[9].mxu0 }
 0x450   :  { %v441_v63 = vpop.f32.mrb[10].mxu0 }
 0x451   :  { %v444_v0 = vmax.f32 %v439_v61, 0.0  ;;  %v695_v2 = vpop.f32.mrb[11].mxu0 }
 0x453   :  { %v445_v3 = vadd.f32 %v444_v0, %v278_v43 }
 0x455   :  { %v455_v4 = vpack.c.bf16 %v445_v3, %v445_v3 }
 0x457   :  { %705 = vmatmul.mubr.msk.bf16.vlgmr.msra.gmra.mrb[8].mxu1 %vm68_vm1, %v455_v4 }
 0x52a   :  { %v523_v5 = vpop.f32.mrb[8].mxu1 }
 0x52b   :  { %v524_v6 = vadd.f32 %v600_v1, %v523_v5  ;;  %v706_v7 = vpop.f32.mrb[9].mxu1 }
 0x52c   :  { %v526_v8 = vpop.f32.mrb[10].mxu1 }
 0x52d   :  { %v529_v9 = vmax.f32 %v524_v6, 0.0  ;;  %v707_v10 = vpop.f32.mrb[11].mxu1 }
 0x52f   :  { %531 = vst.msk [vmem:[#allocation2] sm:$0xff] %vm530_vm2, %v529_v9 }
 0x530   :  { %746 = shalt.err (!%p743_p4)
}
 0x531   :  { %s747_s12 = scalar_lea.hbm %s956_s7, 128 }
 0x532   :  { %p748_p5 = scmp.ne.s32.totalorder %s956_s7, %s747_s12  ;;  %p751_p6 = scmp.lt.u32.totalorder %s747_s12, %s956_s7 }
 0x534   :  { %p753_p7 = pnand %p751_p6, %p748_p5 }
 0x536   :  { %756 = shalt.err (!%p753_p7)
}
 0x537   :  { %541 = dma.vmem_to_hbm [thread:$0]  %s539_s10, 128, %s956_s7, [#allocation3]  }
 0x538   :  { %757 = dma.done.wait [#allocation3], 128  }
 0x539   :  { %758 = vsyncadd [#allocation3], 4294967168 }
 0x53a   :  { %545 = vsyncpa [#allocation3], 1 }

</bundles_post_ra>
